<compile_context>
chip_gen: v7x
topology: tpu7x:2x2x1
jax: 0.10.0
libtpu: 0.0.40
codegen_flags: <defaults>
</compile_context>

<pallas_src>
from functools import lru_cache

import numpy as np
import jax
import jax.numpy as jnp
from jax.experimental import pallas as pl
from jax.experimental.pallas import tpu as pltpu

# ----- small, deterministic config (consistent with the module's __init__) -----
BATCH = 2
EMBEDDING_DIM = 16
OUTPUT_NODE_DIM = 8
HIDDEN_DIM = 32
NUM_LAYERS = 3
NUM_NODES = 8                 # target_num_nodes
LANES = 128                   # lane width of the packed constants slab / output
EMB_PAD_ROWS = 8              # embedding padded to (8, 128) for an aligned DMA


# --------------------------- host-side graph glue ---------------------------
def build_edge_index(batch_size: int, num_nodes: int):
    """Exactly the edge_list / batch_indices loops from the PyTorch forward.
    The generated edge set is symmetric and duplicate-free by construction."""
    edge_list, batch_indices = [], []
    for b in range(batch_size):
        for i in range(num_nodes):
            for j in range(i + 1, min(i + 3, num_nodes)):
                edge_list.append([b * num_nodes + i, b * num_nodes + j])
                edge_list.append([b * num_nodes + j, b * num_nodes + i])
        batch_indices.extend([b] * num_nodes)
    edge_index = np.asarray(edge_list, dtype=np.int32).T            # (2, E)
    batch_tensor = np.asarray(batch_indices, dtype=np.int32)        # (B*N,)
    return edge_index, batch_tensor


def build_gcn_norm_adj(edge_index: np.ndarray, num_total_nodes: int) -> np.ndarray:
    """Dense equivalent of PyG gcn_norm: A_hat = D^{-1/2} (A + I) D^{-1/2}.

    NOTE: A[dst, src] = 1.0 dedups repeated edges and the degree is taken from
    row sums of (A + I); this matches PyG GCNConv for the symmetric,
    duplicate-free edge_index generated above."""
    A = np.zeros((num_total_nodes, num_total_nodes), dtype=np.float32)
    src, dst = edge_index
    A[dst, src] = 1.0                       # message j -> i aggregated at row i
    A = A + np.eye(num_total_nodes, dtype=np.float32)   # self-loops
    deg = A.sum(axis=1)
    dinv = 1.0 / np.sqrt(deg)
    return (dinv[:, None] * A * dinv[None, :]).astype(np.float32)


def build_selector(batch_size: int, num_nodes: int) -> np.ndarray:
    """One-hot (B*N, B): row b*N+i selects graph-embedding b (host-only; folded
    into M0 = A_hat @ S, never shipped to the kernel)."""
    S = np.zeros((batch_size * num_nodes, batch_size), dtype=np.float32)
    S[np.arange(batch_size * num_nodes),
      np.arange(batch_size * num_nodes) // num_nodes] = 1.0
    return S


@lru_cache(maxsize=None)
def _graph_structure(batch_size: int, num_nodes: int):
    """Cache the O(B*N^2) host graph construction by (B, N)."""
    edge_index, batch_tensor = build_edge_index(batch_size, num_nodes)
    ahat = build_gcn_norm_adj(edge_index, batch_size * num_nodes)
    sel = build_selector(batch_size, num_nodes)
    m0 = (ahat @ sel).astype(np.float32)          # (BN, B): folds the expand
    return edge_index, batch_tensor, ahat, m0


# ------------------------- constant packing (host side) -------------------------
def _align8(r: int) -> int:
    return (r + 7) & ~7


def _pack_constants(params, ahat: np.ndarray, m0: np.ndarray):
    """Pack all pre-transposed/fused/padded constants into one (R, 128) f32 slab.

    Each block starts at an 8-aligned row and has a row count that is a multiple
    of 8; biases are replicated to BN rows; returns (device_array, layout) with
    layout[name] = (row_start, n_rows, n_cols)."""
    H, E, OUT = HIDDEN_DIM, EMBEDDING_DIM, OUTPUT_NODE_DIM
    bn, b = ahat.shape[0], m0.shape[1]
    # Packing assumes everything fits a single 128-lane slab / 8-row emb pad.
    assert bn <= LANES and b <= EMB_PAD_ROWS and E <= LANES and H <= LANES

    w_emb = np.asarray(params["w_emb"], np.float32)                    # (H, E)
    b_emb = np.asarray(params["b_emb"], np.float32).reshape(1, H)
    wc = np.asarray(params["wc"], np.float32)                          # (L, H, H)
    bc = np.asarray(params["bc"], np.float32).reshape(NUM_LAYERS, 1, H)
    w_out = np.asarray(params["w_out"], np.float32)                    # (OUT, H)
    b_out = np.asarray(params["b_out"], np.float32).reshape(1, OUT)

    # Fuse embedding_transform into conv0 and fold BOTH biases into B0:
    #   conv0(S·(emb Wemb^T + b_emb)) = (M0 emb) W_fused + B0
    #   W_fused = Wemb^T Wc0^T ; B0 = rowsum(M0)[:,None]·(b_emb Wc0^T) + bc0
    w_fused = (w_emb.T @ wc[0].T).astype(np.float32)                   # (E, H)
    b_fused = (b_emb @ wc[0].T).astype(np.float32)                     # (1, H)
    b0_all = (m0.sum(axis=1, keepdims=True) @ b_fused + bc[0]).astype(np.float32)

    # Tile-aligned padding: M0 -> (BN, 8) zero cols (annihilates padded emb rows),
    # W_fused -> (128, H) zero rows (annihilates padded emb cols).
    m0_pad = np.zeros((bn, EMB_PAD_ROWS), np.float32)
    m0_pad[:, :b] = m0
    w_fused_pad = np.zeros((LANES, H), np.float32)
    w_fused_pad[:E, :] = w_fused

    # Lane-padded output head + per-layer biases replicated to BN rows.
    w_outT_pad = np.zeros((H, LANES), np.float32)
    w_outT_pad[:, :OUT] = w_out.T
    b_out_rep = np.zeros((bn, LANES), np.float32)
    b_out_rep[:, :OUT] = b_out

    blocks = {
        "m0": m0_pad,                             # (BN, 8)
        "w_fused": w_fused_pad,                   # (128, H)
        "b0": b0_all,                             # (BN, H)  both biases folded
        "ahat": ahat.astype(np.float32),          # (BN, BN)
    }
    for l in range(1, NUM_LAYERS):
        blocks[f"wc{l}T"] = wc[l].T.copy()                                # (H, H)
        blocks[f"bc{l}"] = np.broadcast_to(bc[l], (bn, H)).copy()         # (BN, H)
    blocks["w_outT"] = w_outT_pad                 # (H, 128)
    blocks["b_out"] = b_out_rep                   # (BN, 128)

    layout, row = {}, 0
    for name, arr in blocks.items():
        layout[name] = (row, arr.shape[0], arr.shape[1])
        row = _align8(row + arr.shape[0])
    total_rows = _align8(row)

    consts = np.zeros((total_rows, LANES), np.float32)
    for name, arr in blocks.items():
        r0, nr, nc = layout[name]
        consts[r0:r0 + nr, :nc] = arr
    return jnp.asarray(consts), layout


# ------------------------------- Pallas kernel -------------------------------
def _make_kernel(layout):
    """Kernel closure over the static packed-constants layout (no in-kernel .T,
    no in-kernel broadcasts: all biases are pre-replicated to BN rows)."""

    def sl(c_ref, name):
        r0, nr, nc = layout[name]
        return c_ref[r0:r0 + nr, 0:nc]            # static, 8-row-aligned slice

    def kernel(emb_ref, c_ref, out_ref):
        # t = M0_pad @ emb_pad : (BN, 128); zero cols of M0_pad / zero rows of
        # emb_pad make the padding exact.
        t = jnp.dot(sl(c_ref, "m0"), emb_ref[...],
                    preferred_element_type=jnp.float32)
        # conv0 with embedding_transform fused in and both biases folded into B0.
        x = jnp.maximum(
            jnp.dot(t, sl(c_ref, "w_fused"), preferred_element_type=jnp.float32)
            + sl(c_ref, "b0"), 0.0)
        ahat = sl(c_ref, "ahat")                                   # (BN, BN)
        # remaining GCNConv layers + ReLU (statically unrolled; NUM_LAYERS small)
        for l in range(1, NUM_LAYERS):
            xw = jnp.dot(x, sl(c_ref, f"wc{l}T"),
                         preferred_element_type=jnp.float32)        # X W^T
            x = jnp.maximum(
                jnp.dot(ahat, xw, preferred_element_type=jnp.float32)
                + sl(c_ref, f"bc{l}"), 0.0)                          # aligned vadd
        # node_output head -> lane-dense (BN, 128) unmasked store; cols >= OUT zero
        out_ref[...] = (jnp.dot(x, sl(c_ref, "w_outT"),
                                preferred_element_type=jnp.float32)
                        + sl(c_ref, "b_out")).astype(out_ref.dtype)

    return kernel


# --------------------------------- wrapper -----------------------------------
def make_ast_decoder(params, batch_size: int, num_nodes: int = NUM_NODES):
    """Build graph structure + packed constants once; return a jitted forward."""
    edge_index, batch_tensor, ahat, m0 = _graph_structure(batch_size, num_nodes)
    consts, layout = _pack_constants(params, ahat, m0)
    kernel = _make_kernel(layout)
    bn = batch_size * num_nodes

    # Advisory cost hint so XLA schedules the tiny custom call correctly.
    flops = (2 * bn * EMB_PAD_ROWS * LANES                 # M0 @ emb_pad
             + 2 * bn * LANES * HIDDEN_DIM                 # (M0 emb) @ W_fused
             + (NUM_LAYERS - 1) * (2 * bn * HIDDEN_DIM * HIDDEN_DIM
                                   + 2 * bn * bn * HIDDEN_DIM)
             + 2 * bn * HIDDEN_DIM * LANES)                # output head
    bytes_accessed = 4 * (EMB_PAD_ROWS * LANES + consts.shape[0] * LANES + bn * LANES)

    vmem = pl.BlockSpec(memory_space=pltpu.MemorySpace.VMEM)
    pallas_fwd = pl.pallas_call(
        kernel,
        out_shape=jax.ShapeDtypeStruct((bn, LANES), jnp.float32),
        in_specs=[vmem, vmem],          # 2 input DMAs: padded embedding + slab
        out_specs=vmem,
        cost_estimate=pl.CostEstimate(flops=flops, transcendentals=0,
                                      bytes_accessed=bytes_accessed),
    )

    @jax.jit
    def forward(embedding):
        # Zero-pad the (B, E) embedding to a full (8, 128) tile so the kernel's
        # input DMA and first MXU operand are unmasked/aligned.
        emb_pad = jnp.zeros((EMB_PAD_ROWS, LANES), jnp.float32)
        emb_pad = emb_pad.at[:batch_size, :EMBEDDING_DIM].set(
            embedding.astype(jnp.float32))
        out_pad = pallas_fwd(emb_pad, consts)               # (BN, 128) lane-dense
        return out_pad[:, :OUTPUT_NODE_DIM].reshape(
            batch_size, num_nodes, OUTPUT_NODE_DIM)

    edge_index_j = jnp.asarray(edge_index)
    batch_j = jnp.asarray(batch_tensor)

    def apply(embedding):
        return {
            "node_features": forward(embedding),
            "edge_index": edge_index_j,
            "batch": batch_j,
            "num_nodes_per_graph": [num_nodes] * batch_size,
        }

    return apply


# ------------------------------ numpy reference ------------------------------
def reference_forward_np(embedding, params, num_nodes=NUM_NODES):
    """Unfused float64 numpy reference matching the PyTorch module semantics."""
    batch_size = embedding.shape[0]
    _, _, ahat_np, _ = _graph_structure(batch_size, num_nodes)
    ahat = ahat_np.astype(np.float64)
    emb = np.asarray(embedding, np.float64)
    w_emb = np.asarray(params["w_emb"], np.float64)
    b_emb = np.asarray(params["b_emb"], np.float64)
    wc = np.asarray(params["wc"], np.float64)
    bc = np.asarray(params["bc"], np.float64)
    w_out = np.asarray(params["w_out"], np.float64)
    b_out = np.asarray(params["b_out"], np.float64)
    h0 = emb @ w_emb.T + b_emb                               # embedding_transform
    x = np.repeat(h0, num_nodes, axis=0)                     # expand to B*N nodes
    for l in range(NUM_LAYERS):
        x = np.maximum(ahat @ (x @ wc[l].T) + bc[l], 0.0)    # GCNConv + ReLU
    out = x @ w_out.T + b_out                                # node_output
    return out.reshape(batch_size, num_nodes, OUTPUT_NODE_DIM)


# ------------------------------------ main ------------------------------------
if __name__ == "__main__":
    key = jax.random.PRNGKey(0)
    ks = jax.random.split(key, 7)
    scale = 0.25
    # Deterministic synthetic parameters (PyTorch nn.Linear weight layout: (out, in)).
    params = {
        "w_emb": jax.random.normal(ks[0], (HIDDEN_DIM, EMBEDDING_DIM), jnp.float32) * scale,
        "b_emb": jax.random.normal(ks[1], (1, HIDDEN_DIM), jnp.float32) * scale,
        "wc":    jax.random.normal(ks[2], (NUM_LAYERS, HIDDEN_DIM, HIDDEN_DIM), jnp.float32) * scale,
        "bc":    jax.random.normal(ks[3], (NUM_LAYERS, 1, HIDDEN_DIM), jnp.float32) * scale,
        "w_out": jax.random.normal(ks[4], (OUTPUT_NODE_DIM, HIDDEN_DIM), jnp.float32) * scale,
        "b_out": jax.random.normal(ks[5], (1, OUTPUT_NODE_DIM), jnp.float32) * scale,
    }
    # TODO(synk): edge_predictor (Linear(2H, 1)) is declared in __init__ but never
    # used in forward, so it is intentionally not instantiated here.
    embedding = jax.random.normal(ks[6], (BATCH, EMBEDDING_DIM), jnp.float32)

    decoder = make_ast_decoder(params, BATCH, NUM_NODES)
    result = decoder(embedding)
    node_features = jax.block_until_ready(result["node_features"])

    # Second call exercises the cached / pre-compiled path (no host graph rebuild,
    # no retrace, single packed-constants buffer reused).
    jax.block_until_ready(decoder(embedding)["node_features"])

    ref = reference_forward_np(np.asarray(embedding), params, num_nodes=NUM_NODES)
    # Tolerance is sized to absorb MXU matmul-pass precision (worst case single
    # bf16 pass per dot); any semantic error (wrong fusion/bias/adjacency) is
    # orders of magnitude larger than this threshold.
    np.testing.assert_allclose(np.asarray(node_features, np.float64), ref,
                               rtol=2e-2, atol=1e-3)
    assert node_features.shape == (BATCH, NUM_NODES, OUTPUT_NODE_DIM)
    assert result["edge_index"].shape[0] == 2
    assert result["batch"].shape == (BATCH * NUM_NODES,)
    assert result["num_nodes_per_graph"] == [NUM_NODES] * BATCH

    print("KERNEL_OK")
</pallas_src>

<mosaic_0001>
module attributes {stable_mosaic.version = 11 : i64} {
  func.func @kernel(%arg0: memref<8x128xf32, #tpu.memory_space<vmem>>, %arg1: memref<320x128xf32, #tpu.memory_space<vmem>>, %arg2: memref<16x128xf32, #tpu.memory_space<vmem>>) attributes {dimension_semantics = [], scalar_prefetch = 0 : i64, scratch_operands = 0 : i64, tpu.core_type = #tpu.core_type<tc>} {
    %c0 = arith.constant 0 : index
    %c0_0 = arith.constant 0 : index
    %0 = vector.load %arg1[%c0, %c0_0] : memref<320x128xf32, #tpu.memory_space<vmem>>, vector<16x8xf32>
    %c0_1 = arith.constant 0 : index
    %c0_2 = arith.constant 0 : index
    %1 = vector.load %arg0[%c0_1, %c0_2] : memref<8x128xf32, #tpu.memory_space<vmem>>, vector<8x128xf32>
    %cst = arith.constant dense<0.000000e+00> : vector<16x128xf32>
    %2 = tpu.matmul %0, %1, %cst {dimension_numbers = #tpu.dot_dimension_numbers<[1], [0], [0], [1], [0, 0, 1, 1], [], []>} : vector<16x8xf32>, vector<8x128xf32>, vector<16x128xf32> -> vector<16x128xf32>
    %c16 = arith.constant 16 : index
    %c0_3 = arith.constant 0 : index
    %3 = vector.load %arg1[%c16, %c0_3] : memref<320x128xf32, #tpu.memory_space<vmem>>, vector<128x32xf32>
    %cst_4 = arith.constant dense<0.000000e+00> : vector<16x32xf32>
    %4 = tpu.matmul %2, %3, %cst_4 {dimension_numbers = #tpu.dot_dimension_numbers<[1], [0], [0], [1], [0, 0, 1, 1], [], []>} : vector<16x128xf32>, vector<128x32xf32>, vector<16x32xf32> -> vector<16x32xf32>
    %c144 = arith.constant 144 : index
    %c0_5 = arith.constant 0 : index
    %5 = vector.load %arg1[%c144, %c0_5] : memref<320x128xf32, #tpu.memory_space<vmem>>, vector<16x32xf32>
    %6 = arith.addf %4, %5 : vector<16x32xf32>
    %cst_6 = arith.constant 0.000000e+00 : f32
    %7 = vector.broadcast %cst_6 : f32 to vector<16x32xf32>
    %8 = arith.maximumf %6, %7 : vector<16x32xf32>
    %c160 = arith.constant 160 : index
    %c0_7 = arith.constant 0 : index
    %9 = vector.load %arg1[%c160, %c0_7] : memref<320x128xf32, #tpu.memory_space<vmem>>, vector<16x16xf32>
    %c176 = arith.constant 176 : index
    %c0_8 = arith.constant 0 : index
    %10 = vector.load %arg1[%c176, %c0_8] : memref<320x128xf32, #tpu.memory_space<vmem>>, vector<32x32xf32>
    %cst_9 = arith.constant dense<0.000000e+00> : vector<16x32xf32>
    %11 = tpu.matmul %8, %10, %cst_9 {dimension_numbers = #tpu.dot_dimension_numbers<[1], [0], [0], [1], [0, 0, 1, 1], [], []>} : vector<16x32xf32>, vector<32x32xf32>, vector<16x32xf32> -> vector<16x32xf32>
    %cst_10 = arith.constant dense<0.000000e+00> : vector<16x32xf32>
    %12 = tpu.matmul %9, %11, %cst_10 {dimension_numbers = #tpu.dot_dimension_numbers<[1], [0], [0], [1], [0, 0, 1, 1], [], []>} : vector<16x16xf32>, vector<16x32xf32>, vector<16x32xf32> -> vector<16x32xf32>
    %c208 = arith.constant 208 : index
    %c0_11 = arith.constant 0 : index
    %13 = vector.load %arg1[%c208, %c0_11] : memref<320x128xf32, #tpu.memory_space<vmem>>, vector<16x32xf32>
    %14 = arith.addf %12, %13 : vector<16x32xf32>
    %cst_12 = arith.constant 0.000000e+00 : f32
    %15 = vector.broadcast %cst_12 : f32 to vector<16x32xf32>
    %16 = arith.maximumf %14, %15 : vector<16x32xf32>
    %c224 = arith.constant 224 : index
    %c0_13 = arith.constant 0 : index
    %17 = vector.load %arg1[%c224, %c0_13] : memref<320x128xf32, #tpu.memory_space<vmem>>, vector<32x32xf32>
    %cst_14 = arith.constant dense<0.000000e+00> : vector<16x32xf32>
    %18 = tpu.matmul %16, %17, %cst_14 {dimension_numbers = #tpu.dot_dimension_numbers<[1], [0], [0], [1], [0, 0, 1, 1], [], []>} : vector<16x32xf32>, vector<32x32xf32>, vector<16x32xf32> -> vector<16x32xf32>
    %cst_15 = arith.constant dense<0.000000e+00> : vector<16x32xf32>
    %19 = tpu.matmul %9, %18, %cst_15 {dimension_numbers = #tpu.dot_dimension_numbers<[1], [0], [0], [1], [0, 0, 1, 1], [], []>} : vector<16x16xf32>, vector<16x32xf32>, vector<16x32xf32> -> vector<16x32xf32>
    %c256 = arith.constant 256 : index
    %c0_16 = arith.constant 0 : index
    %20 = vector.load %arg1[%c256, %c0_16] : memref<320x128xf32, #tpu.memory_space<vmem>>, vector<16x32xf32>
    %21 = arith.addf %19, %20 : vector<16x32xf32>
    %cst_17 = arith.constant 0.000000e+00 : f32
    %22 = vector.broadcast %cst_17 : f32 to vector<16x32xf32>
    %23 = arith.maximumf %21, %22 : vector<16x32xf32>
    %c272 = arith.constant 272 : index
    %c0_18 = arith.constant 0 : index
    %24 = vector.load %arg1[%c272, %c0_18] : memref<320x128xf32, #tpu.memory_space<vmem>>, vector<32x128xf32>
    %cst_19 = arith.constant dense<0.000000e+00> : vector<16x128xf32>
    %25 = tpu.matmul %23, %24, %cst_19 {dimension_numbers = #tpu.dot_dimension_numbers<[1], [0], [0], [1], [0, 0, 1, 1], [], []>} : vector<16x32xf32>, vector<32x128xf32>, vector<16x128xf32> -> vector<16x128xf32>
    %c304 = arith.constant 304 : index
    %c0_20 = arith.constant 0 : index
    %26 = vector.load %arg1[%c304, %c0_20] : memref<320x128xf32, #tpu.memory_space<vmem>>, vector<16x128xf32>
    %27 = arith.addf %25, %26 : vector<16x128xf32>
    %c0_21 = arith.constant 0 : index
    %c0_22 = arith.constant 0 : index
    %28 = vector.load %arg2[%c0_21, %c0_22] : memref<16x128xf32, #tpu.memory_space<vmem>>, vector<16x128xf32>
    tpu.vector_store %arg2[%c0_21, %c0_22], %27 {strides = array<i32>} : memref<16x128xf32, #tpu.memory_space<vmem>>, vector<16x128xf32>,
    return
  }
}

</mosaic_0001>

<bundles_post_ra>
// kernel: forward.1
= control target key start
LH: loop header
LB: loop body
LE: loop exit
PB: predicated region body
PF: predicated region fallthrough
CT: control target
= control target key end

     0   :  { %7 = vsyncpa [#allocation3], 0  ;;  %s874_s9 = smov [#allocation2]   ;;  %s923_s0 = inlined_call_operand.vmem [shape: f32[8,128], index: 0, kind: input, shape index: {}]   ;;  %s924_s1 = inlined_call_operand.hbm [shape: f32[320,128], index: 1, kind: input, shape index: {}]   ;;  %s925_s2 = inlined_call_operand.vmem [shape: f32[16,128], index: 2, kind: output, shape index: {}]  }
   0x1   :  { %s15_s10 = sshll.u32 %s874_s9, 4  ;;  %s850_s13 = scalar_lea.hbm %s924_s1, 5120  ;;  %s16_s10 = int_to_ptr.vmem [resolvable:$true] %s15_s10 }
   0x2   :  { %p851_p0 = scmp.ne.s32.totalorder %s924_s1, %s850_s13  ;;  %p854_p1 = scmp.lt.u32.totalorder %s850_s13, %s924_s1 }
   0x4   :  { %p856_p2 = pnand %p854_p1, %p851_p0 }
   0x6   :  { %859 = shalt.err (!%p856_p2)
}
   0x7   :  { %s860_s18 = scalar_lea.vmem %s16_s10, 5120  ;;  %p865_p4 = scmp.lt.s32.totalorder %s16_s10, %s16_s10 }
   0x8   :  { %p861_p3 = scmp.ne.s32.totalorder %s16_s10, %s860_s18  ;;  %p866_p5 = scmp.lt.s32.totalorder %s860_s18, %s860_s18 }
   0xa   :  { %p867_p6 = por %p866_p5, %p865_p4 }
   0xc   :  { %p868_p7 = pnand %p867_p6, %p861_p3 }
   0xe   :  { %871 = shalt.err (!%p868_p7)
}
   0xf   :  { %s875_s19 = smov 128   ;;  %s876_s20 = smov 8  }
  0x10   :  { %21 = dma.hbm_to_vmem [thread:$0]  %s924_s1, 5120, %s16_s10, [#allocation3], %s875_s19, %s875_s19, %s876_s20  }
  0x11   :  { %872 = dma.done.wait [#allocation3], 5120  }
  0x12   :  { %873 = vsyncadd [#allocation3], 4294962176  ;;  %vm28_vm0 = vcmask 64512   ;;  %v27_v0 = vld [vmem:[%s923_s0] sm:$0xff]  ;;  %v26_v2 = vld [vmem:[#allocation2 + $0x8] sm:$0xff]  ;;  %vm211_vm1 = vcmask 261120  }
  0x13   :  { %v25_v1 = vld [vmem:[#allocation2] sm:$0xff]  ;;  %696 = vmatprep.subr.mxu0 %v27_v0  ;;  %v110_v3 = vld [vmem:[#allocation2 + $0x10] sm:$0xff]  ;;  %v111_v4 = vld [vmem:[#allocation2 + $0x18] sm:$0xff]  ;;  %vm295_vm2 = vcmask 130048  }
  0x14   :  { %698 = vmatprep.mubr.msk.f32.mxu0 %vm28_vm0, %v25_v1  ;;  %v112_v5 = vld [vmem:[#allocation2 + $0x20] sm:$0xff]  ;;  %697 = vmatpush3.msra.mxu0 %v27_v0  ;;  %v783_v6 = vpack.c.bf16 %v111_v4, %v110_v3  ;;  %v113_v7 = vld [vmem:[#allocation2 + $0x28] sm:$0xff]  ;;  %v114_v9 = vld [vmem:[#allocation2 + $0x30] sm:$0xff] }
  0x15   :  { %699 = vmatmul.mubr.msk.f32.vlgmr.msra.gmra.mrb[0].mxu0 %vm28_vm0, %v26_v2  ;;  %v787_v8 = vpack.c.bf16 %v113_v7, %v112_v5  ;;  %v115_v10 = vld [vmem:[#allocation2 + $0x38] sm:$0xff]  ;;  %v116_v12 = vld [vmem:[#allocation2 + $0x40] sm:$0xff]  ;;  %v117_v13 = vld [vmem:[#allocation2 + $0x48] sm:$0xff] }
  0x16   :  { %784 = vmatprep.subr.bf16.mxu1 %v783_v6  ;;  %v791_v11 = vpack.c.bf16 %v115_v10, %v114_v9  ;;  %v795_v14 = vpack.c.bf16 %v117_v13, %v116_v12  ;;  %v118_v15 = vld [vmem:[#allocation2 + $0x50] sm:$0xff]  ;;  %v119_v16 = vld [vmem:[#allocation2 + $0x58] sm:$0xff]  ;;  %v120_v18 = vld [vmem:[#allocation2 + $0x60] sm:$0xff] }
  0x17   :  { %786 = vmatpush3.bf16.msra.mxu1 %v783_v6  ;;  %v799_v17 = vpack.c.bf16 %v119_v16, %v118_v15  ;;  %v121_v19 = vld [vmem:[#allocation2 + $0x68] sm:$0xff]  ;;  %v122_v21 = vld [vmem:[#allocation2 + $0x70] sm:$0xff]  ;;  %v123_v22 = vld [vmem:[#allocation2 + $0x78] sm:$0xff] }
  0x18   :  { %788 = vmatprep.subr.bf16.mxu1 %v787_v8  ;;  %v803_v20 = vpack.c.bf16 %v121_v19, %v120_v18  ;;  %v807_v23 = vpack.c.bf16 %v123_v22, %v122_v21  ;;  %v124_v24 = vld [vmem:[#allocation2 + $0x80] sm:$0xff]  ;;  %v125_v25 = vld [vmem:[#allocation2 + $0x88] sm:$0xff]  ;;  %v207_v27 = vld [vmem:[#allocation2 + $0xb0] sm:$0xff] }
  0x19   :  { %v811_v26 = vpack.c.bf16 %v125_v25, %v124_v24  ;;  %v208_v28 = vld [vmem:[#allocation2 + $0xb8] sm:$0xff]  ;;  %v209_v32 = vld [vmem:[#allocation2 + $0xc0] sm:$0xff]  ;;  %v210_v33 = vld [vmem:[#allocation2 + $0xc8] sm:$0xff] }
  0x1a   :  { %v815_v29 = vpack.c.bf16 %v208_v28, %v207_v27  ;;  %v819_v34 = vpack.c.bf16 %v210_v33, %v209_v32  ;;  %v127_v35 = vld [vmem:[#allocation2 + $0x98] sm:$0xff]  ;;  %v126_v36 = vld [vmem:[#allocation2 + $0x90] sm:$0xff]  ;;  %v205_v43 = vld [vmem:[#allocation2 + $0xa0] sm:$0xff] }
  0x1b   :  { %790 = vmatpush3.bf16.msra.mxu1 %v787_v8  ;;  %v379_v44 = vld [vmem:[#allocation2 + $0xe0] sm:$0xff]  ;;  %v380_v45 = vld [vmem:[#allocation2 + $0xe8] sm:$0xff]  ;;  %v381_v51 = vld [vmem:[#allocation2 + $0xf0] sm:$0xff] }
  0x1c   :  { %792 = vmatprep.subr.bf16.mxu1 %v791_v11  ;;  %816 = vmatprep.subr.bf16.mxu0 %v815_v29  ;;  %v827_v49 = vpack.c.bf16 %v380_v45, %v379_v44  ;;  %v206_v50 = vld [vmem:[#allocation2 + $0xa8] sm:$0xff]  ;;  %v382_v52 = vld [vmem:[#allocation2 + $0xf8] sm:$0xff]  ;;  %v293_v55 = vld [vmem:[#allocation2 + $0xd0] sm:$0xff] }
  0x1d   :  { %818 = vmatpush3.bf16.msra.mxu0 %v815_v29  ;;  %v831_v53 = vpack.c.bf16 %v382_v52, %v381_v51  ;;  %v294_v54 = vld [vmem:[#allocation2 + $0xd8] sm:$0xff]  ;;  %v543_v62 = vld [vmem:[#allocation2 + $0x110] sm:$0xff]  ;;  %v545_v4 = vld [vmem:[#allocation2 + $0x120] sm:$0xff] }
  0x1e   :  { %820 = vmatprep.subr.bf16.mxu0 %v819_v34  ;;  %v544_v63 = vld [vmem:[#allocation2 + $0x118] sm:$0xff]  ;;  %v546_v5 = vld [vmem:[#allocation2 + $0x128] sm:$0xff]  ;;  %v464_v8 = vld [vmem:[#allocation2 + $0x100] sm:$0xff] }
  0x1f   :  { %794 = vmatpush3.bf16.msra.mxu1 %v791_v11  ;;  %v839_v3 = vpack.c.bf16 %v544_v63, %v543_v62  ;;  %v843_v6 = vpack.c.bf16 %v546_v5, %v545_v4  ;;  %v465_v7 = vld [vmem:[#allocation2 + $0x108] sm:$0xff]  ;;  %v548_v15 = vld [vmem:[#allocation2 + $0x138] sm:$0xff]  ;;  %v547_v16 = vld [vmem:[#allocation2 + $0x130] sm:$0xff] }
  0x20   :  { %796 = vmatprep.subr.bf16.mxu1 %v795_v14 }
  0x21   :  { %822 = vmatpush3.bf16.msra.mxu0 %v819_v34 }
  0x23   :  { %798 = vmatpush3.bf16.msra.mxu1 %v795_v14 }
  0x24   :  { %800 = vmatprep.subr.bf16.mxu1 %v799_v17 }
  0x27   :  { %802 = vmatpush3.bf16.msra.mxu1 %v799_v17 }
  0x28   :  { %804 = vmatprep.subr.bf16.mxu1 %v803_v20 }
  0x2b   :  { %806 = vmatpush3.bf16.msra.mxu1 %v803_v20 }
  0x2c   :  { %808 = vmatprep.subr.bf16.mxu1 %v807_v23 }
  0x2f   :  { %810 = vmatpush3.bf16.msra.mxu1 %v807_v23 }
  0x30   :  { %812 = vmatprep.subr.bf16.mxu1 %v811_v26 }
  0x33   :  { %814 = vmatpush3.bf16.msra.mxu1 %v811_v26 }
  0xe8   :  { %v700_v30 = vpop.f32.mrb[0].mxu0 }
  0xe9   :  { %v101_v31 = vpop.f32.mrb[1].mxu0 }
  0xea   :  { %733 = vmatprep.mubr.f32.mxu1 %v101_v31 }
  0xeb   :  { %734 = vmatmul.mubr.f32.vlgmr.msra.gmra.mrb[0].mxu1 %v700_v30 }
 0x1be   :  { %v735_v37 = vpop.f32.mrb[0].mxu1 }
 0x1bf   :  { %v200_v38 = vadd.f32 %v735_v37, %v127_v35  ;;  %v194_v39 = vpop.f32.mrb[1].mxu1 }
 0x1c0   :  { %v195_v40 = vadd.f32 %v194_v39, %v126_v36 }
 0x1c1   :  { %v204_v42 = vmax.f32 %v200_v38, 0.0 }
 0x1c2   :  { %v203_v41 = vmax.f32 %v195_v40, 0.0 }
 0x1c4   :  { %744 = vmatprep.mubr.msk.f32.mxu0 %vm211_vm1, %v203_v41 }
 0x1c5   :  { %745 = vmatmul.mubr.msk.f32.vlgmr.msra.gmra.mrb[2].mxu0 %vm211_vm1, %v204_v42 }
 0x1c6   :  { %751 = vmatprep.mubr.msk.f32.mxu0 %vm295_vm2, %v205_v43 }
 0x298   :  { %v746_v46 = vpop.f32.mrb[2].mxu0 }
 0x299   :  { %v284_v47 = vpop.f32.mrb[3].mxu0 }
 0x29a   :  { %v823_v48 = vpack.c.bf16 %v746_v46, %v284_v47 }
 0x29c   :  { %824 = vmatprep.subr.bf16.mxu0 %v823_v48 }
 0x29d   :  { %826 = vmatpush3.bf16.msra.mxu0 %v823_v48 }
 0x29e   :  { %828 = vmatprep.subr.bf16.mxu0 %v827_v49 }
 0x2a0   :  { %752 = vmatmul.mubr.msk.f32.vlgmr.msra.gmra.mrb[4].mxu0 %vm295_vm2, %v206_v50 }
 0x2a1   :  { %830 = vmatpush3.bf16.msra.mxu0 %v827_v49 }
 0x2a2   :  { %832 = vmatprep.subr.bf16.mxu0 %v831_v53 }
 0x2a5   :  { %834 = vmatpush3.bf16.msra.mxu0 %v831_v53 }
 0x373   :  { %v753_v56 = vpop.f32.mrb[4].mxu0 }
 0x374   :  { %v374_v57 = vadd.f32 %v753_v56, %v294_v54  ;;  %v368_v58 = vpop.f32.mrb[5].mxu0 }
 0x375   :  { %v369_v59 = vadd.f32 %v368_v58, %v293_v55 }
 0x376   :  { %v378_v61 = vmax.f32 %v374_v57, 0.0 }
 0x377   :  { %v377_v60 = vmax.f32 %v369_v59, 0.0 }
 0x379   :  { %762 = vmatprep.mubr.msk.f32.mxu0 %vm211_vm1, %v377_v60 }
 0x37a   :  { %763 = vmatmul.mubr.msk.f32.vlgmr.msra.gmra.mrb[6].mxu0 %vm211_vm1, %v378_v61 }
 0x37b   :  { %769 = vmatprep.mubr.msk.f32.mxu0 %vm295_vm2, %v205_v43 }
 0x44d   :  { %v764_v0 = vpop.f32.mrb[6].mxu0 }
 0x44e   :  { %v455_v1 = vpop.f32.mrb[7].mxu0 }
 0x44f   :  { %v835_v2 = vpack.c.bf16 %v764_v0, %v455_v1 }
 0x451   :  { %836 = vmatprep.subr.bf16.mxu0 %v835_v2 }
 0x452   :  { %838 = vmatpush3.bf16.msra.mxu0 %v835_v2 }
 0x453   :  { %840 = vmatprep.subr.bf16.mxu0 %v839_v3 }
 0x455   :  { %770 = vmatmul.mubr.msk.f32.vlgmr.msra.gmra.mrb[8].mxu0 %vm295_vm2, %v206_v50 }
 0x456   :  { %842 = vmatpush3.bf16.msra.mxu0 %v839_v3 }
 0x457   :  { %844 = vmatprep.subr.bf16.mxu0 %v843_v6 }
 0x45a   :  { %846 = vmatpush3.bf16.msra.mxu0 %v843_v6 }
 0x528   :  { %v771_v9 = vpop.f32.mrb[8].mxu0 }
 0x529   :  { %v538_v10 = vadd.f32 %v771_v9, %v465_v7  ;;  %v532_v11 = vpop.f32.mrb[9].mxu0 }
 0x52a   :  { %v533_v12 = vadd.f32 %v532_v11, %v464_v8 }
 0x52b   :  { %v542_v14 = vmax.f32 %v538_v10, 0.0 }
 0x52c   :  { %v541_v13 = vmax.f32 %v533_v12, 0.0 }
 0x52e   :  { %780 = vmatprep.mubr.msk.f32.mxu0 %vm211_vm1, %v541_v13 }
 0x52f   :  { %781 = vmatmul.mubr.msk.f32.vlgmr.msra.gmra.mrb[10].mxu0 %vm211_vm1, %v542_v14 }
 0x602   :  { %v782_v17 = vpop.f32.mrb[10].mxu0 }
 0x603   :  { %v627_v18 = vadd.f32 %v782_v17, %v548_v15  ;;  %v621_v19 = vpop.f32.mrb[11].mxu0 }
 0x604   :  { %v622_v20 = vadd.f32 %v621_v19, %v547_v16 }
 0x605   :  { %631 = vst [vmem:[%s925_s2 + $0x8] sm:$0xff] %v627_v18 }
 0x606   :  { %630 = vst [vmem:[%s925_s2] sm:$0xff] %v622_v20 }
 0x607   :  { %636 = vsyncpa [#allocation3], 1 }

</bundles_post_ra>
